<compile_context>
chip_gen: v7x
topology: tpu7x:2x2x1
jax: 0.10.0
libtpu: 0.0.40
codegen_flags: <defaults>
</compile_context>

<pallas_src>
import jax
import jax.numpy as jnp
from jax.experimental import pallas as pl
from jax.experimental.pallas import tpu as pltpu

# Real / hardware-aligned layer dims.
F_IN = 13     # real input features
F_PAD = 128   # padded contraction dim for fc1
H_PAD = 128   # hidden width 100 -> 128
O_PAD = 128   # fc4 output padded to a full lane tile (real result in col 0)


def _mlp_kernel(x_ref,
                w1_ref, b1_ref,
                w2_ref, b2_ref,
                w3_ref, b3_ref,
                w4_ref, b4_ref,
                o_ref,
                xpad_ref):
    # Pad the (tb, 13) input tile into a zero-filled (tb, 128) VMEM scratch so
    # fc1 runs as a native K=128 MXU matmul.  Re-zero every step (cheap) so
    # the kernel is correct even when the batch grid is sharded across cores.
    xpad_ref[...] = jnp.zeros_like(xpad_ref)
    xpad_ref[:, 0:F_IN] = x_ref[...]

    # fc1 + ReLU (f32 accumulation, f32 bias-add / ReLU)
    h = jnp.dot(xpad_ref[...], w1_ref[...], preferred_element_type=jnp.float32)
    h = jnp.maximum(h + b1_ref[...], 0.0)
    # fc2 + ReLU
    h = jnp.dot(h.astype(w2_ref.dtype), w2_ref[...],
                preferred_element_type=jnp.float32)
    h = jnp.maximum(h + b2_ref[...], 0.0)
    # fc3 + ReLU
    h = jnp.dot(h.astype(w3_ref.dtype), w3_ref[...],
                preferred_element_type=jnp.float32)
    h = jnp.maximum(h + b3_ref[...], 0.0)
    # fc4 (no activation).  w4 is zero-padded (H_PAD, O_PAD) with the real
    # weights in column 0; only that column is written back.
    h = jnp.dot(h.astype(w4_ref.dtype), w4_ref[...],
                preferred_element_type=jnp.float32)
    h = h + b4_ref[...]
    o_ref[...] = h[:, 0:1].astype(o_ref.dtype)


def _pad2(a, shape):
    """Zero-pad a 2-D array up to `shape`."""
    out = jnp.zeros(shape, a.dtype)
    return out.at[:a.shape[0], :a.shape[1]].set(a)


def _batch_map(i):
    return (i, 0)


def _resident_map(i):
    return (0, 0)


def prepare_params(params, compute_dtype=jnp.bfloat16):
    """Pad + cast weights/biases ONCE (hoisted out of the per-call path).

    Weights are cast to compute_dtype (bf16 default -> MXU-native); biases
    stay f32 since bias-add / ReLU run on the VPU in f32.
    """
    return {
        "w1": _pad2(params["w1"].astype(compute_dtype), (F_PAD, H_PAD)),
        "w2": _pad2(params["w2"].astype(compute_dtype), (H_PAD, H_PAD)),
        "w3": _pad2(params["w3"].astype(compute_dtype), (H_PAD, H_PAD)),
        "w4": _pad2(params["w4"].astype(compute_dtype), (H_PAD, O_PAD)),
        "b1": _pad2(params["b1"].astype(jnp.float32), (1, H_PAD)),
        "b2": _pad2(params["b2"].astype(jnp.float32), (1, H_PAD)),
        "b3": _pad2(params["b3"].astype(jnp.float32), (1, H_PAD)),
        "b4": _pad2(params["b4"].astype(jnp.float32), (1, O_PAD)),
    }


def _choose_batch_tile(b_pad8, block_b):
    """Pick a batch tile: big enough to amortize per-step overhead, but with
    >= 2 grid steps for large batches so v7x can shard across its 2 TCs."""
    if block_b is not None:
        tb = max(8, (min(block_b, b_pad8) // 8) * 8)
    elif b_pad8 <= 512:
        tb = b_pad8                       # single grid step for small batches
    else:
        half = pl.cdiv(b_pad8, 2)
        tb = min(1024, pl.cdiv(half, 8) * 8)
    return tb


def mlp_forward(x, prepared, *, block_b=None):
    """x: (B, 13) float32.  prepared: output of prepare_params().

    Returns (B, 1) float32, matching PyTorch Net.forward.
    """
    B, f_in = x.shape
    assert f_in == F_IN, f_in
    compute_dtype = prepared["w1"].dtype

    # Pad batch to a sublane multiple, then to a multiple of the batch tile.
    b_pad8 = pl.cdiv(max(B, 8), 8) * 8
    tb = _choose_batch_tile(b_pad8, block_b)
    b_pad = pl.cdiv(b_pad8, tb) * tb

    # Only the (cheap) batch pad is materialized; features stay 13-wide.
    xp = _pad2(x.astype(compute_dtype), (b_pad, F_IN))

    grid = (b_pad // tb,)

    in_specs = [
        pl.BlockSpec((tb, F_IN), _batch_map),          # x tile (pipelined)
        pl.BlockSpec((F_PAD, H_PAD), _resident_map),   # w1 (VMEM-resident)
        pl.BlockSpec((1, H_PAD), _resident_map),       # b1
        pl.BlockSpec((H_PAD, H_PAD), _resident_map),   # w2
        pl.BlockSpec((1, H_PAD), _resident_map),       # b2
        pl.BlockSpec((H_PAD, H_PAD), _resident_map),   # w3
        pl.BlockSpec((1, H_PAD), _resident_map),       # b3
        pl.BlockSpec((H_PAD, O_PAD), _resident_map),   # w4
        pl.BlockSpec((1, O_PAD), _resident_map),       # b4
    ]
    out_spec = pl.BlockSpec((tb, 1), _batch_map)        # only column 0 written

    out = pl.pallas_call(
        _mlp_kernel,
        grid=grid,
        in_specs=in_specs,
        out_specs=out_spec,
        out_shape=jax.ShapeDtypeStruct((b_pad, 1), jnp.float32),
        scratch_shapes=[pltpu.VMEM((tb, F_PAD), compute_dtype)],
        compiler_params=pltpu.CompilerParams(
            dimension_semantics=("parallel",)),
    )(xp,
      prepared["w1"], prepared["b1"],
      prepared["w2"], prepared["b2"],
      prepared["w3"], prepared["b3"],
      prepared["w4"], prepared["b4"])

    return out[:B]


def init_params(key):
    """Mimic nn.Linear default init (uniform +/- 1/sqrt(fan_in)).
    Weights are stored transposed relative to PyTorch: shape (in, out)."""
    dims = [(13, 100), (100, 100), (100, 100), (100, 1)]
    params = {}
    for i, (fan_in, fan_out) in enumerate(dims, start=1):
        key, kw, kb = jax.random.split(key, 3)
        bound = 1.0 / jnp.sqrt(fan_in)
        params[f"w{i}"] = jax.random.uniform(
            kw, (fan_in, fan_out), jnp.float32, -bound, bound)
        params[f"b{i}"] = jax.random.uniform(
            kb, (1, fan_out), jnp.float32, -bound, bound)
    return params


def reference_forward(x, params, compute_dtype=jnp.float32):
    """Pure-JAX reference mirroring the kernel's mixed-precision scheme
    (compute_dtype matmul inputs, f32 accumulation, f32 bias/ReLU)."""
    def dot(a, w):
        return jnp.dot(a.astype(compute_dtype), w.astype(compute_dtype),
                       preferred_element_type=jnp.float32)
    h = jnp.maximum(dot(x, params["w1"]) + params["b1"], 0.0)
    h = jnp.maximum(dot(h, params["w2"]) + params["b2"], 0.0)
    h = jnp.maximum(dot(h, params["w3"]) + params["b3"], 0.0)
    return dot(h, params["w4"]) + params["b4"]


if __name__ == "__main__":
    key = jax.random.PRNGKey(0)
    key, kx1, kx2 = jax.random.split(key, 3)
    params = init_params(key)

    # Padded/cast parameters are prepared once (hoisted out of the call path).
    prep_bf16 = prepare_params(params, jnp.bfloat16)   # default fast path
    prep_f32 = prepare_params(params, jnp.float32)     # exact-validation path

    # Small batch (original demo size), bf16 fast path — single grid step.
    B1 = 8
    x1 = jax.random.normal(kx1, (B1, 13), jnp.float32)
    out1 = jax.block_until_ready(mlp_forward(x1, prep_bf16))
    ref1 = reference_forward(x1, params, jnp.bfloat16)
    assert out1.shape == (B1, 1), out1.shape
    assert jnp.allclose(out1, ref1, atol=5e-2, rtol=5e-2), "mismatch (bf16, B=8)"

    # Larger, non-aligned batch, f32 path with a small tile — exercises batch
    # padding and a multi-step pipelined grid; checked against f32 reference.
    B2 = 200
    x2 = jax.random.normal(kx2, (B2, 13), jnp.float32)
    out2 = jax.block_until_ready(mlp_forward(x2, prep_f32, block_b=64))
    ref2 = reference_forward(x2, params, jnp.float32)
    assert out2.shape == (B2, 1), out2.shape
    assert jnp.allclose(out2, ref2, atol=1e-4, rtol=1e-4), "mismatch (f32, B=200)"

    # Same batch on the default bf16 path with auto tile selection.
    out3 = jax.block_until_ready(mlp_forward(x2, prep_bf16))
    ref3 = reference_forward(x2, params, jnp.bfloat16)
    assert out3.shape == (B2, 1), out3.shape
    assert jnp.allclose(out3, ref3, atol=5e-2, rtol=5e-2), "mismatch (bf16, B=200)"

    print("KERNEL_OK")
</pallas_src>

<mosaic_0001>
module attributes {stable_mosaic.version = 11 : i64} {
  func.func @_mlp_kernel(%arg0: i32, %arg1: memref<8x13xbf16, #tpu.memory_space<vmem>>, %arg2: memref<128x128xbf16, #tpu.memory_space<vmem>>, %arg3: memref<1x128xf32, #tpu.memory_space<vmem>>, %arg4: memref<128x128xbf16, #tpu.memory_space<vmem>>, %arg5: memref<1x128xf32, #tpu.memory_space<vmem>>, %arg6: memref<128x128xbf16, #tpu.memory_space<vmem>>, %arg7: memref<1x128xf32, #tpu.memory_space<vmem>>, %arg8: memref<128x128xbf16, #tpu.memory_space<vmem>>, %arg9: memref<1x128xf32, #tpu.memory_space<vmem>>, %arg10: memref<8x1xf32, #tpu.memory_space<vmem>>, %arg11: memref<8x128xbf16, #tpu.memory_space<vmem>>) attributes {dimension_semantics = [#tpu.dimension_semantics<parallel>], iteration_bounds = array<i64: 1>, scalar_prefetch = 0 : i64, scratch_operands = 1 : i64, tpu.core_type = #tpu.core_type<tc>, window_params = [{transform_indices = @transform_0, window_bounds = array<i64: 8, 13>}, {pipeline_mode = #tpu.pipeline_mode<synchronous>, transform_indices = @transform_1, window_bounds = array<i64: 128, 128>}, {pipeline_mode = #tpu.pipeline_mode<synchronous>, transform_indices = @transform_2, window_bounds = array<i64: 1, 128>}, {pipeline_mode = #tpu.pipeline_mode<synchronous>, transform_indices = @transform_3, window_bounds = array<i64: 128, 128>}, {pipeline_mode = #tpu.pipeline_mode<synchronous>, transform_indices = @transform_4, window_bounds = array<i64: 1, 128>}, {pipeline_mode = #tpu.pipeline_mode<synchronous>, transform_indices = @transform_5, window_bounds = array<i64: 128, 128>}, {pipeline_mode = #tpu.pipeline_mode<synchronous>, transform_indices = @transform_6, window_bounds = array<i64: 1, 128>}, {pipeline_mode = #tpu.pipeline_mode<synchronous>, transform_indices = @transform_7, window_bounds = array<i64: 128, 128>}, {pipeline_mode = #tpu.pipeline_mode<synchronous>, transform_indices = @transform_8, window_bounds = array<i64: 1, 128>}, {transform_indices = @transform_9, window_bounds = array<i64: 8, 1>}]} {
    %cst = arith.constant 0.000000e+00 : bf16
    %0 = vector.broadcast %cst : bf16 to vector<8x128xbf16>
    %c0 = arith.constant 0 : index
    %c0_0 = arith.constant 0 : index
    %1 = vector.load %arg11[%c0, %c0_0] : memref<8x128xbf16, #tpu.memory_space<vmem>>, vector<8x128xbf16>
    tpu.vector_store %arg11[%c0, %c0_0], %0 {strides = array<i32>} : memref<8x128xbf16, #tpu.memory_space<vmem>>, vector<8x128xbf16>,
    %c0_1 = arith.constant 0 : index
    %c0_2 = arith.constant 0 : index
    %2 = vector.load %arg1[%c0_1, %c0_2] : memref<8x13xbf16, #tpu.memory_space<vmem>>, vector<8x13xbf16>
    %c0_3 = arith.constant 0 : index
    %c0_4 = arith.constant 0 : index
    %3 = vector.load %arg11[%c0_3, %c0_4] : memref<8x128xbf16, #tpu.memory_space<vmem>>, vector<8x13xbf16>
    tpu.vector_store %arg11[%c0_3, %c0_4], %2 {strides = array<i32>} : memref<8x128xbf16, #tpu.memory_space<vmem>>, vector<8x13xbf16>,
    %c0_5 = arith.constant 0 : index
    %c0_6 = arith.constant 0 : index
    %4 = vector.load %arg11[%c0_5, %c0_6] : memref<8x128xbf16, #tpu.memory_space<vmem>>, vector<8x128xbf16>
    %c0_7 = arith.constant 0 : index
    %c0_8 = arith.constant 0 : index
    %5 = vector.load %arg2[%c0_7, %c0_8] : memref<128x128xbf16, #tpu.memory_space<vmem>>, vector<128x128xbf16>
    %cst_9 = arith.constant dense<0.000000e+00> : vector<8x128xf32>
    %6 = tpu.matmul %4, %5, %cst_9 {dimension_numbers = #tpu.dot_dimension_numbers<[1], [0], [0], [1], [0, 0, 1, 1], [], []>} : vector<8x128xbf16>, vector<128x128xbf16>, vector<8x128xf32> -> vector<8x128xf32>
    %c0_10 = arith.constant 0 : index
    %c0_11 = arith.constant 0 : index
    %7 = vector.load %arg3[%c0_10, %c0_11] : memref<1x128xf32, #tpu.memory_space<vmem>>, vector<1x128xf32>
    %8 = vector.broadcast %7 : vector<1x128xf32> to vector<8x128xf32>
    %9 = arith.addf %6, %8 : vector<8x128xf32>
    %cst_12 = arith.constant 0.000000e+00 : f32
    %10 = vector.broadcast %cst_12 : f32 to vector<8x128xf32>
    %11 = arith.maximumf %9, %10 : vector<8x128xf32>
    %12 = arith.truncf %11 : vector<8x128xf32> to vector<8x128xbf16>
    %c0_13 = arith.constant 0 : index
    %c0_14 = arith.constant 0 : index
    %13 = vector.load %arg4[%c0_13, %c0_14] : memref<128x128xbf16, #tpu.memory_space<vmem>>, vector<128x128xbf16>
    %cst_15 = arith.constant dense<0.000000e+00> : vector<8x128xf32>
    %14 = tpu.matmul %12, %13, %cst_15 {dimension_numbers = #tpu.dot_dimension_numbers<[1], [0], [0], [1], [0, 0, 1, 1], [], []>} : vector<8x128xbf16>, vector<128x128xbf16>, vector<8x128xf32> -> vector<8x128xf32>
    %c0_16 = arith.constant 0 : index
    %c0_17 = arith.constant 0 : index
    %15 = vector.load %arg5[%c0_16, %c0_17] : memref<1x128xf32, #tpu.memory_space<vmem>>, vector<1x128xf32>
    %16 = vector.broadcast %15 : vector<1x128xf32> to vector<8x128xf32>
    %17 = arith.addf %14, %16 : vector<8x128xf32>
    %cst_18 = arith.constant 0.000000e+00 : f32
    %18 = vector.broadcast %cst_18 : f32 to vector<8x128xf32>
    %19 = arith.maximumf %17, %18 : vector<8x128xf32>
    %20 = arith.truncf %19 : vector<8x128xf32> to vector<8x128xbf16>
    %c0_19 = arith.constant 0 : index
    %c0_20 = arith.constant 0 : index
    %21 = vector.load %arg6[%c0_19, %c0_20] : memref<128x128xbf16, #tpu.memory_space<vmem>>, vector<128x128xbf16>
    %cst_21 = arith.constant dense<0.000000e+00> : vector<8x128xf32>
    %22 = tpu.matmul %20, %21, %cst_21 {dimension_numbers = #tpu.dot_dimension_numbers<[1], [0], [0], [1], [0, 0, 1, 1], [], []>} : vector<8x128xbf16>, vector<128x128xbf16>, vector<8x128xf32> -> vector<8x128xf32>
    %c0_22 = arith.constant 0 : index
    %c0_23 = arith.constant 0 : index
    %23 = vector.load %arg7[%c0_22, %c0_23] : memref<1x128xf32, #tpu.memory_space<vmem>>, vector<1x128xf32>
    %24 = vector.broadcast %23 : vector<1x128xf32> to vector<8x128xf32>
    %25 = arith.addf %22, %24 : vector<8x128xf32>
    %cst_24 = arith.constant 0.000000e+00 : f32
    %26 = vector.broadcast %cst_24 : f32 to vector<8x128xf32>
    %27 = arith.maximumf %25, %26 : vector<8x128xf32>
    %28 = arith.truncf %27 : vector<8x128xf32> to vector<8x128xbf16>
    %c0_25 = arith.constant 0 : index
    %c0_26 = arith.constant 0 : index
    %29 = vector.load %arg8[%c0_25, %c0_26] : memref<128x128xbf16, #tpu.memory_space<vmem>>, vector<128x128xbf16>
    %cst_27 = arith.constant dense<0.000000e+00> : vector<8x128xf32>
    %30 = tpu.matmul %28, %29, %cst_27 {dimension_numbers = #tpu.dot_dimension_numbers<[1], [0], [0], [1], [0, 0, 1, 1], [], []>} : vector<8x128xbf16>, vector<128x128xbf16>, vector<8x128xf32> -> vector<8x128xf32>
    %c0_28 = arith.constant 0 : index
    %c0_29 = arith.constant 0 : index
    %31 = vector.load %arg9[%c0_28, %c0_29] : memref<1x128xf32, #tpu.memory_space<vmem>>, vector<1x128xf32>
    %32 = vector.broadcast %31 : vector<1x128xf32> to vector<8x128xf32>
    %33 = arith.addf %30, %32 : vector<8x128xf32>
    %34 = vector.extract_strided_slice %33 {offsets = [0, 0], sizes = [8, 1], strides = [1, 1]} : vector<8x128xf32> to vector<8x1xf32>
    %c0_30 = arith.constant 0 : index
    %c0_31 = arith.constant 0 : index
    %35 = vector.load %arg10[%c0_30, %c0_31] : memref<8x1xf32, #tpu.memory_space<vmem>>, vector<8x1xf32>
    tpu.vector_store %arg10[%c0_30, %c0_31], %34 {strides = array<i32>} : memref<8x1xf32, #tpu.memory_space<vmem>>, vector<8x1xf32>,
    return
  }
  func.func @transform_0(%arg0: i32) -> (i32, i32) {
    %c0_i32 = arith.constant 0 : i32
    %c0_i32_0 = arith.constant 0 : i32
    return %arg0, %c0_i32 : i32, i32
  }
  func.func @transform_1(%arg0: i32) -> (i32, i32) {
    %c0_i32 = arith.constant 0 : i32
    %c0_i32_0 = arith.constant 0 : i32
    %c0_i32_1 = arith.constant 0 : i32
    return %c0_i32, %c0_i32_0 : i32, i32
  }
  func.func @transform_2(%arg0: i32) -> (i32, i32) {
    %c0_i32 = arith.constant 0 : i32
    %c0_i32_0 = arith.constant 0 : i32
    %c0_i32_1 = arith.constant 0 : i32
    return %c0_i32, %c0_i32_0 : i32, i32
  }
  func.func @transform_3(%arg0: i32) -> (i32, i32) {
    %c0_i32 = arith.constant 0 : i32
    %c0_i32_0 = arith.constant 0 : i32
    %c0_i32_1 = arith.constant 0 : i32
    return %c0_i32, %c0_i32_0 : i32, i32
  }
  func.func @transform_4(%arg0: i32) -> (i32, i32) {
    %c0_i32 = arith.constant 0 : i32
    %c0_i32_0 = arith.constant 0 : i32
    %c0_i32_1 = arith.constant 0 : i32
    return %c0_i32, %c0_i32_0 : i32, i32
  }
  func.func @transform_5(%arg0: i32) -> (i32, i32) {
    %c0_i32 = arith.constant 0 : i32
    %c0_i32_0 = arith.constant 0 : i32
    %c0_i32_1 = arith.constant 0 : i32
    return %c0_i32, %c0_i32_0 : i32, i32
  }
  func.func @transform_6(%arg0: i32) -> (i32, i32) {
    %c0_i32 = arith.constant 0 : i32
    %c0_i32_0 = arith.constant 0 : i32
    %c0_i32_1 = arith.constant 0 : i32
    return %c0_i32, %c0_i32_0 : i32, i32
  }
  func.func @transform_7(%arg0: i32) -> (i32, i32) {
    %c0_i32 = arith.constant 0 : i32
    %c0_i32_0 = arith.constant 0 : i32
    %c0_i32_1 = arith.constant 0 : i32
    return %c0_i32, %c0_i32_0 : i32, i32
  }
  func.func @transform_8(%arg0: i32) -> (i32, i32) {
    %c0_i32 = arith.constant 0 : i32
    %c0_i32_0 = arith.constant 0 : i32
    %c0_i32_1 = arith.constant 0 : i32
    return %c0_i32, %c0_i32_0 : i32, i32
  }
  func.func @transform_9(%arg0: i32) -> (i32, i32) {
    %c0_i32 = arith.constant 0 : i32
    %c0_i32_0 = arith.constant 0 : i32
    return %arg0, %c0_i32 : i32, i32
  }
}

</mosaic_0001>

<bundles_post_ra>
// kernel: tpu_custom_call.1
= control target key start
LH: loop header
LB: loop body
LE: loop exit
PB: predicated region body
PF: predicated region fallthrough
CT: control target
= control target key end

     0   :  { %14 = vsyncpa [#allocation4], 0  ;;  %s1060_s0 = inlined_call_operand.hbm [shape: bf16[8,13], index: 0, kind: input, shape index: {}]   ;;  %s1061_s1 = inlined_call_operand.hbm [shape: bf16[128,128], index: 1, kind: input, shape index: {}]   ;;  %s1062_s2 = inlined_call_operand.vmem [shape: f32[1,128], index: 2, kind: input, shape index: {}]   ;;  %s1063_s3 = inlined_call_operand.hbm [shape: bf16[128,128], index: 3, kind: input, shape index: {}]   ;;  %s1064_s4 = inlined_call_operand.vmem [shape: f32[1,128], index: 4, kind: input, shape index: {}]   ;;  %s1065_s5 = inlined_call_operand.hbm [shape: bf16[128,128], index: 5, kind: input, shape index: {}]   ;;  %s1066_s6 = inlined_call_operand.vmem [shape: f32[1,128], index: 6, kind: input, shape index: {}]   ;;  %s1067_s7 = inlined_call_operand.hbm [shape: bf16[128,128], index: 7, kind: input, shape index: {}]   ;;  %s1068_s8 = inlined_call_operand.vmem [shape: f32[1,128], index: 8, kind: input, shape index: {}]   ;;  %s1069_s9 = inlined_call_operand.vmem [shape: f32[8,1], index: 9, kind: output, shape index: {}]  }
   0x1   :  { %15 = vsyncpa [#allocation6], 0 }
   0x2   :  { %16 = vsyncpa [#allocation9], 0  ;;  %s873_s30 = smov [#allocation5]   ;;  %s757_s13 = scalar_lea.hbm %s1061_s1, 1024 }
   0x3   :  { %s32_s10 = sshll.u32 %s873_s30, 4  ;;  %p758_p0 = scmp.ne.s32.totalorder %s1061_s1, %s757_s13  ;;  %s33_s10 = int_to_ptr.vmem [resolvable:$true] %s32_s10 }
   0x4   :  { %p761_p1 = scmp.lt.u32.totalorder %s757_s13, %s1061_s1 }
   0x6   :  { %p763_p2 = pnand %p761_p1, %p758_p0 }
   0x8   :  { %766 = shalt.err (!%p763_p2)
}
   0x9   :  { %s767_s18 = scalar_lea.vmem %s33_s10, 1024  ;;  %p772_p4 = scmp.lt.s32.totalorder %s33_s10, %s33_s10 }
   0xa   :  { %p768_p3 = scmp.ne.s32.totalorder %s33_s10, %s767_s18  ;;  %p773_p5 = scmp.lt.s32.totalorder %s767_s18, %s767_s18 }
   0xc   :  { %p774_p6 = por %p773_p5, %p772_p4 }
   0xe   :  { %p775_p7 = pnand %p774_p6, %p768_p3 }
  0x10   :  { %778 = shalt.err (!%p775_p7)
}
  0x11   :  { %s874_s19 = smov 64   ;;  %s875_s20 = smov 4  }
  0x12   :  { %38 = dma.hbm_to_vmem [thread:$0]  %s1061_s1, 1024, %s33_s10, [#allocation6], %s874_s19, %s874_s19, %s875_s20  }
  0x13   :  { %s876_s23 = smov [#allocation8]   ;;  %s877_s25 = smov [#allocation3]  }
  0x14   :  { %s60_s24 = sshll.u32 %s876_s23, 4  ;;  %s23_s26 = sshll.u32 %s877_s25, 4  ;;  %s61_s24 = int_to_ptr.vmem [resolvable:$true] %s60_s24  ;;  %s24_s26 = int_to_ptr.vmem [resolvable:$true] %s23_s26 }
  0x15   :  { %s779_s29 = scalar_lea.hbm %s1065_s5, 1024 }
  0x16   :  { %p780_p8 = scmp.ne.s32.totalorder %s1065_s5, %s779_s29  ;;  %p783_p9 = scmp.lt.u32.totalorder %s779_s29, %s1065_s5 }
  0x18   :  { %p785_p10 = pnand %p783_p9, %p780_p8 }
  0x1a   :  { %788 = shalt.err (!%p785_p10)
}
  0x1b   :  { %s789_s1 = scalar_lea.vmem %s61_s24, 1024  ;;  %p794_p12 = scmp.lt.s32.totalorder %s61_s24, %s61_s24 }
  0x1c   :  { %p790_p11 = scmp.ne.s32.totalorder %s61_s24, %s789_s1  ;;  %p795_p13 = scmp.lt.s32.totalorder %s789_s1, %s789_s1 }
  0x1e   :  { %p796_p0 = por %p795_p13, %p794_p12 }
  0x20   :  { %p797_p1 = pnand %p796_p0, %p790_p11 }
  0x22   :  { %800 = shalt.err (!%p797_p1)
}
  0x23   :  { %66 = dma.hbm_to_vmem [thread:$0]  %s1065_s5, 1024, %s61_s24, [#allocation9], %s874_s19, %s874_s19, %s875_s20  }
  0x24   :  { %s801_s17 = scalar_lea.hbm %s1060_s0, 64 }
  0x25   :  { %p802_p2 = scmp.ne.s32.totalorder %s1060_s0, %s801_s17  ;;  %p805_p3 = scmp.lt.u32.totalorder %s801_s17, %s1060_s0 }
  0x27   :  { %p807_p4 = pnand %p805_p3, %p802_p2 }
  0x29   :  { %810 = shalt.err (!%p807_p4)
}
  0x2a   :  { %s811_s25 = scalar_lea.vmem %s24_s26, 64  ;;  %p816_p6 = scmp.lt.s32.totalorder %s24_s26, %s24_s26 }
  0x2b   :  { %p812_p5 = scmp.ne.s32.totalorder %s24_s26, %s811_s25  ;;  %p817_p7 = scmp.lt.s32.totalorder %s811_s25, %s811_s25 }
  0x2d   :  { %p818_p8 = por %p817_p7, %p816_p6 }
  0x2f   :  { %p819_p9 = pnand %p818_p8, %p812_p5 }
  0x31   :  { %822 = shalt.err (!%p819_p9)
}
  0x32   :  { %26 = dma.hbm_to_vmem [thread:$0]  %s1060_s0, 64, %s24_s26, [#allocation4]  }
  0x33   :  { %s878_s27 = smov [#allocation7]   ;;  %s879_s29 = smov [#allocation10]  }
  0x34   :  { %s46_s28 = sshll.u32 %s878_s27, 4  ;;  %s74_s30 = sshll.u32 %s879_s29, 4  ;;  %s47_s28 = int_to_ptr.vmem [resolvable:$true] %s46_s28  ;;  %s75_s30 = int_to_ptr.vmem [resolvable:$true] %s74_s30 }
  0x35   :  { %s823_s13 = scalar_lea.hbm %s1063_s3, 1024 }
  0x36   :  { %p824_p10 = scmp.ne.s32.totalorder %s1063_s3, %s823_s13  ;;  %p827_p11 = scmp.lt.u32.totalorder %s823_s13, %s1063_s3 }
  0x38   :  { %p829_p12 = pnand %p827_p11, %p824_p10 }
  0x3a   :  { %832 = shalt.err (!%p829_p12)
}
  0x3b   :  { %s833_s0 = scalar_lea.vmem %s47_s28, 1024  ;;  %p838_p0 = scmp.lt.s32.totalorder %s47_s28, %s47_s28 }
  0x3c   :  { %p834_p13 = scmp.ne.s32.totalorder %s47_s28, %s833_s0  ;;  %p839_p1 = scmp.lt.s32.totalorder %s833_s0, %s833_s0 }
  0x3e   :  { %p840_p2 = por %p839_p1, %p838_p0 }
  0x40   :  { %p841_p3 = pnand %p840_p2, %p834_p13 }
  0x42   :  { %844 = shalt.err (!%p841_p3)
}
  0x43   :  { %52 = dma.hbm_to_vmem [thread:$0]  %s1063_s3, 1024, %s47_s28, [#allocation6], %s874_s19, %s874_s19, %s875_s20  }
  0x44   :  { %s845_s21 = scalar_lea.hbm %s1067_s7, 1024 }
  0x45   :  { %p846_p4 = scmp.ne.s32.totalorder %s1067_s7, %s845_s21  ;;  %p849_p5 = scmp.lt.u32.totalorder %s845_s21, %s1067_s7 }
  0x47   :  { %p851_p6 = pnand %p849_p5, %p846_p4 }
  0x49   :  { %854 = shalt.err (!%p851_p6)
}
  0x4a   :  { %s855_s24 = scalar_lea.vmem %s75_s30, 1024  ;;  %p860_p8 = scmp.lt.s32.totalorder %s75_s30, %s75_s30 }
  0x4b   :  { %p856_p7 = scmp.ne.s32.totalorder %s75_s30, %s855_s24  ;;  %p861_p9 = scmp.lt.s32.totalorder %s855_s24, %s855_s24 }
  0x4d   :  { %p862_p10 = por %p861_p9, %p860_p8 }
  0x4f   :  { %p863_p11 = pnand %p862_p10, %p856_p7 }
  0x51   :  { %866 = shalt.err (!%p863_p11)
}
  0x52   :  { %80 = dma.hbm_to_vmem [thread:$0]  %s1067_s7, 1024, %s75_s30, [#allocation9], %s874_s19, %s874_s19, %s875_s20  }
  0x53   :  { %867 = dma.done.wait [#allocation4], 64  }
  0x54   :  { %868 = vsyncadd [#allocation4], 4294967232 }
  0x55   :  { %869 = dma.done.wait [#allocation6], 2048  }
  0x56   :  { %870 = vsyncadd [#allocation6], 4294965248 }
  0x57   :  { %871 = dma.done.wait [#allocation9], 2048  }
  0x58   :  { %872 = vsyncadd [#allocation9], 4294965248  ;;  %v880_v0 = vmov 0.0   ;;  %vm881_vm0 = vmmov 0   ;;  %v882_v1 = vmov 0   ;;  %v725_v2 = vld [vmem:[#allocation5] sm:$0xff]  }
  0x59   :  { %635 = vmatprep.subr.bf16.mxu0 %v880_v0  ;;  %651 = vmatprep.mubr.msk.bf16.mxu0 %vm881_vm0, %v880_v0  ;;  %99 = vst [vmem:[#allocation2] sm:$0xf] %v882_v1  ;;  %v726_v3 = vld [vmem:[#allocation5 + $0x8] sm:$0xff]   ;;  %v727_v4 = vld [vmem:[#allocation5 + $0x10] sm:$0xff]   ;;  %vm101_vm1 = vcmask 101376   ;;  %v733_v6 = vld [vmem:[#allocation7] sm:$0xff]  }
  0x5a   :  { %655 = vmatprep.subr.bf16.mxu1 %v880_v0  ;;  %671 = vmatprep.mubr.msk.bf16.mxu1 %vm881_vm0, %v880_v0  ;;  %v100_v5 = vld [vmem:[#allocation3] sm:$0xf]  ;;  %v734_v8 = vld [vmem:[#allocation7 + $0x8] sm:$0xff]   ;;  %v729_v9 = vld [vmem:[#allocation5 + $0x20] sm:$0xff]   ;;  %vm554_vm2 = vcmask 7168  }
  0x5b   :  { %636 = vmatpush3.bf16.msra.mxu0 %v725_v2  ;;  %102 = vst.msk [vmem:[#allocation2] sm:$0xf] %vm101_vm1, %v100_v5  ;;  %v728_v7 = vld [vmem:[#allocation5 + $0x18] sm:$0xff]   ;;  %656 = vmatpush3.bf16.msra.mxu1 %v733_v6  ;;  %v735_v10 = vld [vmem:[#allocation7 + $0x10] sm:$0xff]   ;;  %v730_v11 = vld [vmem:[#allocation5 + $0x28] sm:$0xff]  }
  0x5c   :  { %637 = vmatprep.subr.bf16.mxu0 %v880_v0  ;;  %657 = vmatprep.subr.bf16.mxu1 %v880_v0  ;;  %v736_v12 = vld [vmem:[#allocation7 + $0x18] sm:$0xff]   ;;  %v731_v13 = vld [vmem:[#allocation5 + $0x30] sm:$0xff]   ;;  %v737_v14 = vld [vmem:[#allocation7 + $0x20] sm:$0xff]  }
  0x5d   :  { %v732_v15 = vld [vmem:[#allocation5 + $0x38] sm:$0xff]   ;;  %v738_v16 = vld [vmem:[#allocation7 + $0x28] sm:$0xff]   ;;  %v739_v18 = vld [vmem:[#allocation7 + $0x30] sm:$0xff]  }
  0x5e   :  { %v740_v19 = vld [vmem:[#allocation7 + $0x38] sm:$0xff]   ;;  %v741_v20 = vld [vmem:[#allocation8] sm:$0xff]   ;;  %v742_v21 = vld [vmem:[#allocation8 + $0x8] sm:$0xff]  }
  0x5f   :  { %638 = vmatpush3.bf16.msra.mxu0 %v726_v3  ;;  %658 = vmatpush3.bf16.msra.mxu1 %v734_v8  ;;  %v743_v22 = vld [vmem:[#allocation8 + $0x10] sm:$0xff]   ;;  %v744_v23 = vld [vmem:[#allocation8 + $0x18] sm:$0xff]   ;;  %v745_v24 = vld [vmem:[#allocation8 + $0x20] sm:$0xff]  }
  0x60   :  { %639 = vmatprep.subr.bf16.mxu0 %v880_v0  ;;  %659 = vmatprep.subr.bf16.mxu1 %v880_v0  ;;  %v746_v25 = vld [vmem:[#allocation8 + $0x28] sm:$0xff]   ;;  %v563_v26 = vld [vmem:[%s1062_s2] ss:$0 sm:$0xff]  ;;  %v748_v35 = vld [vmem:[#allocation8 + $0x38] sm:$0xff]  }
  0x61   :  { %v747_v34 = vld [vmem:[#allocation8 + $0x30] sm:$0xff]   ;;  %v749_v36 = vld [vmem:[#allocation10] sm:$0xff]   ;;  %v750_v37 = vld [vmem:[#allocation10 + $0x8] sm:$0xff]  }
  0x62   :  { %v103_v17 = vld [vmem:[#allocation2] sm:$0xf]  ;;  %v751_v38 = vld [vmem:[#allocation10 + $0x10] sm:$0xff]   ;;  %v753_v40 = vld [vmem:[#allocation10 + $0x20] sm:$0xff]  }
  0x63   :  { %640 = vmatpush3.bf16.msra.mxu0 %v727_v4  ;;  %660 = vmatpush3.bf16.msra.mxu1 %v735_v10  ;;  %v752_v39 = vld [vmem:[#allocation10 + $0x18] sm:$0xff]   ;;  %v754_v41 = vld [vmem:[#allocation10 + $0x28] sm:$0xff]   ;;  %v572_v42 = vld [vmem:[%s1064_s4] ss:$0 sm:$0xff] }
  0x64   :  { %641 = vmatprep.subr.bf16.mxu0 %v880_v0  ;;  %661 = vmatprep.subr.bf16.mxu1 %v880_v0  ;;  %v755_v50 = vld [vmem:[#allocation10 + $0x30] sm:$0xff]   ;;  %v756_v51 = vld [vmem:[#allocation10 + $0x38] sm:$0xff]  }
  0x65   :  { %v581_v52 = vld [vmem:[%s1066_s6] ss:$0 sm:$0xff] }
  0x66   :  { %v590_v60 = vld [vmem:[%s1068_s8] ss:$0 sm:$0xff] }
  0x67   :  { %642 = vmatpush3.bf16.msra.mxu0 %v728_v7  ;;  %662 = vmatpush3.bf16.msra.mxu1 %v736_v12 }
  0x68   :  { %643 = vmatprep.subr.bf16.mxu0 %v880_v0  ;;  %663 = vmatprep.subr.bf16.mxu1 %v880_v0 }
  0x6b   :  { %644 = vmatpush3.bf16.msra.mxu0 %v729_v9  ;;  %664 = vmatpush3.bf16.msra.mxu1 %v737_v14 }
  0x6c   :  { %645 = vmatprep.subr.bf16.mxu0 %v880_v0  ;;  %665 = vmatprep.subr.bf16.mxu1 %v880_v0 }
  0x6f   :  { %646 = vmatpush3.bf16.msra.mxu0 %v730_v11  ;;  %666 = vmatpush3.bf16.msra.mxu1 %v738_v16 }
  0x70   :  { %647 = vmatprep.subr.bf16.mxu0 %v880_v0  ;;  %667 = vmatprep.subr.bf16.mxu1 %v880_v0 }
  0x73   :  { %648 = vmatpush3.bf16.msra.mxu0 %v731_v13  ;;  %668 = vmatpush3.bf16.msra.mxu1 %v739_v18 }
  0x74   :  { %649 = vmatprep.subr.bf16.mxu0 %v880_v0  ;;  %669 = vmatprep.subr.bf16.mxu1 %v880_v0 }
  0x77   :  { %650 = vmatpush3.bf16.msra.mxu0 %v732_v15  ;;  %670 = vmatpush3.bf16.msra.mxu1 %v740_v19 }
  0x78   :  { %675 = vmatprep.subr.bf16.mxu0 %v880_v0  ;;  %695 = vmatprep.subr.bf16.mxu1 %v880_v0 }
  0x7a   :  { %652 = vmatmul.mubr.bf16.vlgmr.msra.gmra.mrb[0].mxu0 %v103_v17 }
  0x7b   :  { %691 = vmatprep.mubr.msk.bf16.mxu0 %vm881_vm0, %v880_v0  ;;  %676 = vmatpush3.bf16.msra.mxu0 %v741_v20 }
  0x7c   :  { %677 = vmatprep.subr.bf16.mxu0 %v880_v0 }
  0x7f   :  { %678 = vmatpush3.bf16.msra.mxu0 %v742_v21 }
  0x80   :  { %679 = vmatprep.subr.bf16.mxu0 %v880_v0 }
  0x83   :  { %680 = vmatpush3.bf16.msra.mxu0 %v743_v22 }
  0x84   :  { %681 = vmatprep.subr.bf16.mxu0 %v880_v0 }
  0x87   :  { %682 = vmatpush3.bf16.msra.mxu0 %v744_v23 }
  0x88   :  { %683 = vmatprep.subr.bf16.mxu0 %v880_v0 }
  0x8b   :  { %684 = vmatpush3.bf16.msra.mxu0 %v745_v24 }
  0x8c   :  { %685 = vmatprep.subr.bf16.mxu0 %v880_v0 }
  0x8f   :  { %686 = vmatpush3.bf16.msra.mxu0 %v746_v25 }
  0x90   :  { %687 = vmatprep.subr.bf16.mxu0 %v880_v0 }
  0x93   :  { %688 = vmatpush3.bf16.msra.mxu0 %v747_v34 }
  0x94   :  { %689 = vmatprep.subr.bf16.mxu0 %v880_v0 }
  0x97   :  { %690 = vmatpush3.bf16.msra.mxu0 %v748_v35 }
 0x14d   :  { %v209_v27 = vpop.f32.mrb[0].mxu0 }
 0x14e   :  { %v210_v28 = vadd.f32 %v563_v26, %v209_v27  ;;  %v653_v29 = vpop.f32.mrb[1].mxu0 }
 0x14f   :  { %v212_v30 = vpop.f32.mrb[2].mxu0 }
 0x150   :  { %v215_v31 = vmax.f32 %v210_v28, 0.0  ;;  %v654_v32 = vpop.f32.mrb[3].mxu0 }
 0x152   :  { %v216_v33 = vpack.c.bf16 %v215_v31, %v215_v31 }
 0x154   :  { %672 = vmatmul.mubr.bf16.vlgmr.msra.gmra.mrb[0].mxu1 %v216_v33 }
 0x155   :  { %711 = vmatprep.mubr.msk.bf16.mxu1 %vm881_vm0, %v880_v0  ;;  %696 = vmatpush3.bf16.msra.mxu1 %v749_v36 }
 0x156   :  { %697 = vmatprep.subr.bf16.mxu1 %v880_v0 }
 0x159   :  { %698 = vmatpush3.bf16.msra.mxu1 %v750_v37 }
 0x15a   :  { %699 = vmatprep.subr.bf16.mxu1 %v880_v0 }
 0x15d   :  { %700 = vmatpush3.bf16.msra.mxu1 %v751_v38 }
 0x15e   :  { %701 = vmatprep.subr.bf16.mxu1 %v880_v0 }
 0x161   :  { %702 = vmatpush3.bf16.msra.mxu1 %v752_v39 }
 0x162   :  { %703 = vmatprep.subr.bf16.mxu1 %v880_v0 }
 0x165   :  { %704 = vmatpush3.bf16.msra.mxu1 %v753_v40 }
 0x166   :  { %705 = vmatprep.subr.bf16.mxu1 %v880_v0 }
 0x169   :  { %706 = vmatpush3.bf16.msra.mxu1 %v754_v41 }
 0x16a   :  { %707 = vmatprep.subr.bf16.mxu1 %v880_v0 }
 0x16d   :  { %708 = vmatpush3.bf16.msra.mxu1 %v755_v50 }
 0x16e   :  { %709 = vmatprep.subr.bf16.mxu1 %v880_v0 }
 0x171   :  { %710 = vmatpush3.bf16.msra.mxu1 %v756_v51 }
 0x227   :  { %v322_v43 = vpop.f32.mrb[0].mxu1 }
 0x228   :  { %v323_v44 = vadd.f32 %v572_v42, %v322_v43  ;;  %v673_v45 = vpop.f32.mrb[1].mxu1 }
 0x229   :  { %v325_v46 = vpop.f32.mrb[2].mxu1 }
 0x22a   :  { %v328_v47 = vmax.f32 %v323_v44, 0.0  ;;  %v674_v48 = vpop.f32.mrb[3].mxu1 }
 0x22c   :  { %v329_v49 = vpack.c.bf16 %v328_v47, %v328_v47 }
 0x22e   :  { %692 = vmatmul.mubr.bf16.vlgmr.msra.gmra.mrb[4].mxu0 %v329_v49 }
 0x301   :  { %v435_v53 = vpop.f32.mrb[4].mxu0 }
 0x302   :  { %v436_v54 = vadd.f32 %v581_v52, %v435_v53  ;;  %v693_v55 = vpop.f32.mrb[5].mxu0 }
 0x303   :  { %v438_v56 = vpop.f32.mrb[6].mxu0 }
 0x304   :  { %v441_v57 = vmax.f32 %v436_v54, 0.0  ;;  %v694_v58 = vpop.f32.mrb[7].mxu0 }
 0x306   :  { %v442_v59 = vpack.c.bf16 %v441_v57, %v441_v57 }
 0x308   :  { %712 = vmatmul.mubr.bf16.vlgmr.msra.gmra.mrb[4].mxu1 %v442_v59 }
 0x3db   :  { %v548_v61 = vpop.f32.mrb[4].mxu1 }
 0x3dc   :  { %v549_v62 = vadd.f32 %v590_v60, %v548_v61  ;;  %v713_v63 = vpop.f32.mrb[5].mxu1 }
 0x3dd   :  { %v551_v0 = vpop.f32.mrb[6].mxu1 }
 0x3de   :  { %555 = vst.msk [vmem:[%s1069_s9] sm:$0xff] %vm554_vm2, %v549_v62  ;;  %v714_v1 = vpop.f32.mrb[7].mxu1 }
 0x3df   :  { %560 = vsyncpa [#allocation4], 1 }
 0x3e0   :  { %561 = vsyncpa [#allocation6], 1 }
 0x3e1   :  { %562 = vsyncpa [#allocation9], 1 }

</bundles_post_ra>
